<compile_context>
chip_gen: v6e
topology: v6e:2x2x1
jax: 0.10.0
libtpu: 0.0.40
codegen_flags: <defaults>
</compile_context>

<pallas_src>
import math

import jax
import jax.numpy as jnp
from jax.experimental import pallas as pl
from jax.experimental.pallas import tpu as pltpu

_LAYER_DIMS = [(9, 16), (16, 16), (16, 16), (16, 16), (16, 1)]
_F_IN = 9
_H = 16
_N_LAYERS = len(_LAYER_DIMS)
_MAX_TILE_B = 8192            # keeps worst-case VMEM well inside the 32 MiB budget
_PREC = jax.lax.Precision.HIGHEST


def _mlp_kernel(x_ref, w0_ref, wh_ref, wl_ref, b_ref, o_ref):
    """One batch tile of the fused 5-layer MLP.

    x_ref : [tile_b, 9]   batch tile in natural HBM layout (no wrapper transpose)
    w0_ref: [16, 9]       layer-1 weight, transposed to [out, in]
    wh_ref: [3, 16, 16]   layers 2-4 weights, transposed to [out, in]
    wl_ref: [16, 1]       layer-5 weight (natural [in, out])
    b_ref : [5, 16, 1]    biases (layer-5 uses row 0 only)
    o_ref : [1, tile_b]   lane-dense output row
    """
    # Layer 1: contract over x's feature (last) dim so the MXU absorbs the
    # transpose; the result lands batch-on-lanes: [16, tile_b].
    h = jax.lax.dot_general(
        w0_ref[...], x_ref[...],
        dimension_numbers=(((1,), (1,)), ((), ())),
        preferred_element_type=jnp.float32, precision=_PREC)
    h = jnp.maximum(h + b_ref[0], 0.0)

    # Layers 2-4: [16,16] @ [16,tile_b] on the MXU; batch stays on the lane axis.
    for l in range(_N_LAYERS - 2):
        h = jnp.dot(wh_ref[l], h, preferred_element_type=jnp.float32,
                    precision=_PREC)
        h = jnp.maximum(h + b_ref[l + 1], 0.0)

    # Layer 5 (16 -> 1): VPU multiply + sublane (XLU) reduce; avoids an MXU
    # matmul producing 15 discarded rows plus a row-0 slice copy.
    out = jnp.sum(wl_ref[...] * h, axis=0, keepdims=True)
    o_ref[...] = out + b_ref[_N_LAYERS - 1][0:1, 0:1]


def _pack_params(params):
    """Pack per-layer (W[in,out], b[out]) into the kernel's constant operands."""
    f32 = jnp.float32
    ws = [w.astype(f32) for w, _ in params]
    bs = [b.astype(f32).reshape(-1) for _, b in params]
    w0 = ws[0].T                                    # [16, 9]   (out, in)
    wh = jnp.stack([w.T for w in ws[1:4]])          # [3, 16, 16]
    wl = ws[4].reshape(_H, 1)                       # [16, 1]   (in, out)
    b_all = jnp.zeros((_N_LAYERS, _H, 1), f32)
    for l, b in enumerate(bs):
        b_all = b_all.at[l, :b.shape[0], 0].set(b)
    return w0, wh, wl, b_all


def neural_network_forward(x, params, *, tile_b=_MAX_TILE_B):
    """x: [B, 9].  params: list of (W[in,out], b[out]).  Returns [B, 1] float32."""
    B, F = x.shape
    assert F == _F_IN

    # Batch lives on the lane axis inside the kernel -> tiles are multiples of 128.
    b_lanes = pl.cdiv(B, 128) * 128
    # Keep >= 2 grid steps whenever the batch allows it so the 'parallel' grid
    # axis can be sharded across both TensorCores on v7x megacore.
    tile_cap = (b_lanes // 2) // 128 * 128 if b_lanes >= 256 else b_lanes
    tile_b = max(128, min(tile_b, tile_cap, _MAX_TILE_B))
    B_pad = pl.cdiv(B, tile_b) * tile_b

    # Only the batch dim is (conditionally) zero-padded: no feature padding and
    # no wrapper-side transpose/HBM round trip. Tile-aligned batches pay no copy.
    x = x.astype(jnp.float32)
    if B_pad != B:
        x = jnp.pad(x, ((0, B_pad - B), (0, 0)))

    w0, wh, wl, b_all = _pack_params(params)

    grid = (B_pad // tile_b,)
    out = pl.pallas_call(
        _mlp_kernel,
        out_shape=jax.ShapeDtypeStruct((1, B_pad), jnp.float32),
        grid_spec=pltpu.PrefetchScalarGridSpec(
            num_scalar_prefetch=0,
            grid=grid,
            in_specs=[
                pl.BlockSpec((tile_b, _F_IN), lambda i: (i, 0)),             # x tile
                pl.BlockSpec((_H, _F_IN), lambda i: (0, 0)),                 # W1^T
                pl.BlockSpec((_N_LAYERS - 2, _H, _H), lambda i: (0, 0, 0)),  # W2..W4^T
                pl.BlockSpec((_H, 1), lambda i: (0, 0)),                     # W5
                pl.BlockSpec((_N_LAYERS, _H, 1), lambda i: (0, 0, 0)),       # biases
            ],
            out_specs=pl.BlockSpec((1, tile_b), lambda i: (0, i)),
        ),
        compiler_params=pltpu.CompilerParams(
            dimension_semantics=("parallel",),
            # x window lane-pads 9 -> 128 (~4 MiB/buffer at tile_b=8192, double
            # buffered) + a few [16, tile_b] intermediates: ~16 MiB worst case.
            # 32 MiB is ample headroom and safe on v5e/v6e/v7x; raise both this
            # and _MAX_TILE_B together on 128 MiB-VMEM chips for larger tiles.
            vmem_limit_bytes=32 * 1024 * 1024,
        ),
    )(x, w0, wh, wl, b_all)

    # Padded batch columns (B..B_pad) hold bias-only garbage; discard them here.
    return out[:, :B].T                                               # [B, 1]


def init_params(key):
    """Xavier-uniform weights, zero biases (matches Neural_Network.init_weights)."""
    params = []
    keys = jax.random.split(key, len(_LAYER_DIMS))
    for k, (fan_in, fan_out) in zip(keys, _LAYER_DIMS):
        bound = math.sqrt(6.0 / (fan_in + fan_out))
        w = jax.random.uniform(k, (fan_in, fan_out), jnp.float32,
                               minval=-bound, maxval=bound)
        b = jnp.zeros((fan_out,), jnp.float32)
        params.append((w, b))
    return params


def reference_forward(x, params):
    """Pure-JAX reference of the same forward pass (faithful f32 matmuls)."""
    h = x.astype(jnp.float32)
    for i, (w, b) in enumerate(params):
        h = jnp.dot(h, w, precision=jax.lax.Precision.HIGHEST) + b
        if i < len(params) - 1:
            h = jnp.maximum(h, 0.0)
    return h


if __name__ == "__main__":
    key = jax.random.PRNGKey(0)
    k_param, k_x = jax.random.split(key)

    params = init_params(k_param)
    x = jax.random.normal(k_x, (64, 9), jnp.float32)   # batch=64, in_features=9

    out = neural_network_forward(x, params)
    out = jax.block_until_ready(out)

    ref = reference_forward(x, params)
    assert out.shape == (64, 1)
    assert jnp.allclose(out, ref, atol=1e-5, rtol=1e-5), "mismatch vs reference"

    print("KERNEL_OK")
</pallas_src>

<mosaic_0001>
module attributes {stable_mosaic.version = 11 : i64} {
  func.func @_mlp_kernel(%arg0: i32, %arg1: memref<128x9xf32, #tpu.memory_space<vmem>>, %arg2: memref<16x9xf32, #tpu.memory_space<vmem>>, %arg3: memref<3x16x16xf32, #tpu.memory_space<vmem>>, %arg4: memref<16x1xf32, #tpu.memory_space<vmem>>, %arg5: memref<5x16x1xf32, #tpu.memory_space<vmem>>, %arg6: memref<1x128xf32, #tpu.memory_space<vmem>>) attributes {dimension_semantics = [#tpu.dimension_semantics<parallel>], iteration_bounds = array<i64: 1>, scalar_prefetch = 0 : i64, scratch_operands = 0 : i64, tpu.core_type = #tpu.core_type<tc>, window_params = [{transform_indices = @transform_0, window_bounds = array<i64: 128, 9>}, {pipeline_mode = #tpu.pipeline_mode<synchronous>, transform_indices = @transform_1, window_bounds = array<i64: 16, 9>}, {pipeline_mode = #tpu.pipeline_mode<synchronous>, transform_indices = @transform_2, window_bounds = array<i64: 3, 16, 16>}, {pipeline_mode = #tpu.pipeline_mode<synchronous>, transform_indices = @transform_3, window_bounds = array<i64: 16, 1>}, {pipeline_mode = #tpu.pipeline_mode<synchronous>, transform_indices = @transform_4, window_bounds = array<i64: 5, 16, 1>}, {transform_indices = @transform_5, window_bounds = array<i64: 1, 128>}]} {
    %c0 = arith.constant 0 : index
    %c0_0 = arith.constant 0 : index
    %0 = vector.load %arg2[%c0, %c0_0] : memref<16x9xf32, #tpu.memory_space<vmem>>, vector<16x9xf32>
    %c0_1 = arith.constant 0 : index
    %c0_2 = arith.constant 0 : index
    %1 = vector.load %arg1[%c0_1, %c0_2] : memref<128x9xf32, #tpu.memory_space<vmem>>, vector<128x9xf32>
    %cst = arith.constant dense<0.000000e+00> : vector<16x128xf32>
    %2 = tpu.matmul %0, %1, %cst {dimension_numbers = #tpu.dot_dimension_numbers<[1], [1], [0], [0], [0, 0, 1, 0], [], []>, precision = #tpu.contract_precision<fp32>} : vector<16x9xf32>, vector<128x9xf32>, vector<16x128xf32> -> vector<16x128xf32>
    %c0_3 = arith.constant 0 : index
    %c0_4 = arith.constant 0 : index
    %c0_5 = arith.constant 0 : index
    %3 = vector.load %arg5[%c0_3, %c0_4, %c0_5] : memref<5x16x1xf32, #tpu.memory_space<vmem>>, vector<1x16x1xf32>
    %4 = vector.shape_cast %3 : vector<1x16x1xf32> to vector<16x1xf32>
    %5 = vector.broadcast %4 : vector<16x1xf32> to vector<16x128xf32>
    %6 = arith.addf %2, %5 : vector<16x128xf32>
    %cst_6 = arith.constant 0.000000e+00 : f32
    %7 = vector.broadcast %cst_6 : f32 to vector<16x128xf32>
    %8 = arith.maximumf %6, %7 : vector<16x128xf32>
    %c0_7 = arith.constant 0 : index
    %c0_8 = arith.constant 0 : index
    %c0_9 = arith.constant 0 : index
    %9 = vector.load %arg3[%c0_7, %c0_8, %c0_9] : memref<3x16x16xf32, #tpu.memory_space<vmem>>, vector<1x16x16xf32>
    %10 = vector.shape_cast %9 : vector<1x16x16xf32> to vector<16x16xf32>
    %cst_10 = arith.constant dense<0.000000e+00> : vector<16x128xf32>
    %11 = tpu.matmul %10, %8, %cst_10 {dimension_numbers = #tpu.dot_dimension_numbers<[1], [0], [0], [1], [0, 0, 1, 1], [], []>, precision = #tpu.contract_precision<fp32>} : vector<16x16xf32>, vector<16x128xf32>, vector<16x128xf32> -> vector<16x128xf32>
    %c1 = arith.constant 1 : index
    %c0_11 = arith.constant 0 : index
    %c0_12 = arith.constant 0 : index
    %12 = vector.load %arg5[%c1, %c0_11, %c0_12] : memref<5x16x1xf32, #tpu.memory_space<vmem>>, vector<1x16x1xf32>
    %13 = vector.shape_cast %12 : vector<1x16x1xf32> to vector<16x1xf32>
    %14 = vector.broadcast %13 : vector<16x1xf32> to vector<16x128xf32>
    %15 = arith.addf %11, %14 : vector<16x128xf32>
    %cst_13 = arith.constant 0.000000e+00 : f32
    %16 = vector.broadcast %cst_13 : f32 to vector<16x128xf32>
    %17 = arith.maximumf %15, %16 : vector<16x128xf32>
    %c1_14 = arith.constant 1 : index
    %c0_15 = arith.constant 0 : index
    %c0_16 = arith.constant 0 : index
    %18 = vector.load %arg3[%c1_14, %c0_15, %c0_16] : memref<3x16x16xf32, #tpu.memory_space<vmem>>, vector<1x16x16xf32>
    %19 = vector.shape_cast %18 : vector<1x16x16xf32> to vector<16x16xf32>
    %cst_17 = arith.constant dense<0.000000e+00> : vector<16x128xf32>
    %20 = tpu.matmul %19, %17, %cst_17 {dimension_numbers = #tpu.dot_dimension_numbers<[1], [0], [0], [1], [0, 0, 1, 1], [], []>, precision = #tpu.contract_precision<fp32>} : vector<16x16xf32>, vector<16x128xf32>, vector<16x128xf32> -> vector<16x128xf32>
    %c2 = arith.constant 2 : index
    %c0_18 = arith.constant 0 : index
    %c0_19 = arith.constant 0 : index
    %21 = vector.load %arg5[%c2, %c0_18, %c0_19] : memref<5x16x1xf32, #tpu.memory_space<vmem>>, vector<1x16x1xf32>
    %22 = vector.shape_cast %21 : vector<1x16x1xf32> to vector<16x1xf32>
    %23 = vector.broadcast %22 : vector<16x1xf32> to vector<16x128xf32>
    %24 = arith.addf %20, %23 : vector<16x128xf32>
    %cst_20 = arith.constant 0.000000e+00 : f32
    %25 = vector.broadcast %cst_20 : f32 to vector<16x128xf32>
    %26 = arith.maximumf %24, %25 : vector<16x128xf32>
    %c2_21 = arith.constant 2 : index
    %c0_22 = arith.constant 0 : index
    %c0_23 = arith.constant 0 : index
    %27 = vector.load %arg3[%c2_21, %c0_22, %c0_23] : memref<3x16x16xf32, #tpu.memory_space<vmem>>, vector<1x16x16xf32>
    %28 = vector.shape_cast %27 : vector<1x16x16xf32> to vector<16x16xf32>
    %cst_24 = arith.constant dense<0.000000e+00> : vector<16x128xf32>
    %29 = tpu.matmul %28, %26, %cst_24 {dimension_numbers = #tpu.dot_dimension_numbers<[1], [0], [0], [1], [0, 0, 1, 1], [], []>, precision = #tpu.contract_precision<fp32>} : vector<16x16xf32>, vector<16x128xf32>, vector<16x128xf32> -> vector<16x128xf32>
    %c3 = arith.constant 3 : index
    %c0_25 = arith.constant 0 : index
    %c0_26 = arith.constant 0 : index
    %30 = vector.load %arg5[%c3, %c0_25, %c0_26] : memref<5x16x1xf32, #tpu.memory_space<vmem>>, vector<1x16x1xf32>
    %31 = vector.shape_cast %30 : vector<1x16x1xf32> to vector<16x1xf32>
    %32 = vector.broadcast %31 : vector<16x1xf32> to vector<16x128xf32>
    %33 = arith.addf %29, %32 : vector<16x128xf32>
    %cst_27 = arith.constant 0.000000e+00 : f32
    %34 = vector.broadcast %cst_27 : f32 to vector<16x128xf32>
    %35 = arith.maximumf %33, %34 : vector<16x128xf32>
    %c0_28 = arith.constant 0 : index
    %c0_29 = arith.constant 0 : index
    %36 = vector.load %arg4[%c0_28, %c0_29] : memref<16x1xf32, #tpu.memory_space<vmem>>, vector<16x1xf32>
    %37 = vector.broadcast %36 : vector<16x1xf32> to vector<16x128xf32>
    %38 = arith.mulf %37, %35 : vector<16x128xf32>
    %cst_30 = arith.constant dense<0.000000e+00> : vector<128xf32>
    %39 = vector.multi_reduction <add>, %38, %cst_30 [0] : vector<16x128xf32> to vector<128xf32>
    %40 = vector.shape_cast %39 : vector<128xf32> to vector<1x128xf32>
    %c4 = arith.constant 4 : index
    %c0_31 = arith.constant 0 : index
    %c0_32 = arith.constant 0 : index
    %41 = vector.load %arg5[%c4, %c0_31, %c0_32] : memref<5x16x1xf32, #tpu.memory_space<vmem>>, vector<1x16x1xf32>
    %42 = vector.shape_cast %41 : vector<1x16x1xf32> to vector<16x1xf32>
    %43 = vector.extract_strided_slice %42 {offsets = [0, 0], sizes = [1, 1], strides = [1, 1]} : vector<16x1xf32> to vector<1x1xf32>
    %44 = vector.broadcast %43 : vector<1x1xf32> to vector<1x128xf32>
    %45 = arith.addf %40, %44 : vector<1x128xf32>
    %c0_33 = arith.constant 0 : index
    %c0_34 = arith.constant 0 : index
    %46 = vector.load %arg6[%c0_33, %c0_34] : memref<1x128xf32, #tpu.memory_space<vmem>>, vector<1x128xf32>
    tpu.vector_store %arg6[%c0_33, %c0_34], %45 {strides = array<i32>} : memref<1x128xf32, #tpu.memory_space<vmem>>, vector<1x128xf32>,
    return
  }
  func.func @transform_0(%arg0: i32) -> (i32, i32) {
    %c0_i32 = arith.constant 0 : i32
    %c0_i32_0 = arith.constant 0 : i32
    return %arg0, %c0_i32 : i32, i32
  }
  func.func @transform_1(%arg0: i32) -> (i32, i32) {
    %c0_i32 = arith.constant 0 : i32
    %c0_i32_0 = arith.constant 0 : i32
    %c0_i32_1 = arith.constant 0 : i32
    return %c0_i32, %c0_i32_0 : i32, i32
  }
  func.func @transform_2(%arg0: i32) -> (i32, i32, i32) {
    %c0_i32 = arith.constant 0 : i32
    %c0_i32_0 = arith.constant 0 : i32
    %c0_i32_1 = arith.constant 0 : i32
    %c0_i32_2 = arith.constant 0 : i32
    return %c0_i32, %c0_i32_0, %c0_i32_1 : i32, i32, i32
  }
  func.func @transform_3(%arg0: i32) -> (i32, i32) {
    %c0_i32 = arith.constant 0 : i32
    %c0_i32_0 = arith.constant 0 : i32
    %c0_i32_1 = arith.constant 0 : i32
    return %c0_i32, %c0_i32_0 : i32, i32
  }
  func.func @transform_4(%arg0: i32) -> (i32, i32, i32) {
    %c0_i32 = arith.constant 0 : i32
    %c0_i32_0 = arith.constant 0 : i32
    %c0_i32_1 = arith.constant 0 : i32
    %c0_i32_2 = arith.constant 0 : i32
    return %c0_i32, %c0_i32_0, %c0_i32_1 : i32, i32, i32
  }
  func.func @transform_5(%arg0: i32) -> (i32, i32) {
    %c0_i32 = arith.constant 0 : i32
    %c0_i32_0 = arith.constant 0 : i32
    return %c0_i32, %arg0 : i32, i32
  }
}

</mosaic_0001>

<bundles_post_ra>
// kernel: tpu_custom_call.1
= control target key start
LH: loop header
LB: loop body
LE: loop exit
PB: predicated region body
PF: predicated region fallthrough
CT: control target
= control target key end

     0   :  { %vm51_vm0 = vcmask 72704   ;;  %s3544_s0 = inlined_call_operand.vmem [shape: f32[128,9], index: 0, kind: input, shape index: {}]   ;;  %s3545_s1 = inlined_call_operand.vmem [shape: f32[16,9], index: 1, kind: input, shape index: {}]   ;;  %s3546_s2 = inlined_call_operand.vmem [shape: f32[3,16,16], index: 2, kind: input, shape index: {}]   ;;  %s3547_s3 = inlined_call_operand.vmem [shape: f32[16,1], index: 3, kind: input, shape index: {}]   ;;  %s3548_s4 = inlined_call_operand.vmem [shape: f32[5,16,1], index: 4, kind: input, shape index: {}]   ;;  %s3549_s5 = inlined_call_operand.hbm [shape: f32[1,128], index: 5, kind: output, shape index: {}]  }
   0x1   :  { %v38_v0 = vld [vmem:[%s3544_s0 + $0x78] sm:$0xff]  ;;  %v37_v1 = vld [vmem:[%s3544_s0 + $0x70] sm:$0xff]  ;;  %v36_v2 = vld [vmem:[%s3544_s0 + $0x68] sm:$0xff] }
   0x2   :  { %v104_v3 = vsel %vm51_vm0, %v38_v0, 0  ;;  %v101_v4 = vsel %vm51_vm0, %v37_v1, 0  ;;  %v98_v5 = vsel %vm51_vm0, %v36_v2, 0  ;;  %v35_v6 = vld [vmem:[%s3544_s0 + $0x60] sm:$0xff]  ;;  %v34_v7 = vld [vmem:[%s3544_s0 + $0x58] sm:$0xff]  ;;  %v33_v12 = vld [vmem:[%s3544_s0 + $0x50] sm:$0xff] }
   0x3   :  { %v3017_v8 = vand.u32 4294901760, %v104_v3  ;;  %v3019_v9 = vand.u32 4294901760, %v101_v4  ;;  %v3021_v10 = vand.u32 4294901760, %v98_v5  ;;  %v95_v11 = vsel %vm51_vm0, %v35_v6, 0  ;;  %v32_v24 = vld [vmem:[%s3544_s0 + $0x48] sm:$0xff] }
   0x4   :  { %v3027_v13 = vand.u32 4294901760, %v95_v11  ;;  %v92_v14 = vsel %vm51_vm0, %v34_v7, 0  ;;  %v89_v19 = vsel %vm51_vm0, %v33_v12, 0 }
   0x5   :  { %2605 = vmatprep.subr.mxu0 %v3017_v8  ;;  %v3032_v15 = vsub.f32 %v104_v3, %v3017_v8  ;;  %v3035_v16 = vsub.f32 %v101_v4, %v3019_v9  ;;  %v3038_v17 = vsub.f32 %v98_v5, %v3021_v10  ;;  %v3041_v18 = vand.u32 4294901760, %v92_v14 }
   0x6   :  { %2606 = vmatpush3.xpose.msra.mxu0 %v3017_v8  ;;  %v3055_v23 = vsub.f32 %v95_v11, %v3027_v13 }
   0x7   :  { %2607 = vmatprep.subr.mxu0 %v3019_v9  ;;  %v3046_v20 = vand.u32 4294901760, %v3032_v15  ;;  %v3049_v21 = vand.u32 4294901760, %v3035_v16  ;;  %v3052_v22 = vand.u32 4294901760, %v3038_v17 }
   0x8   :  { %10 = vsyncpa [#allocation3], 0  ;;  %v3065_v27 = vand.u32 4294901760, %v89_v19  ;;  %v86_v28 = vsel %vm51_vm0, %v32_v24, 0  ;;  %v3069_v29 = vsub.f32 %v92_v14, %v3041_v18  ;;  %v3075_v33 = vand.u32 4294901760, %v3055_v23  ;;  %v31_v34 = vld [vmem:[%s3544_s0 + $0x40] sm:$0xff] }
   0x9   :  { %v211_v25 = vsub.f32 %v3032_v15, %v3046_v20  ;;  %v218_v26 = vsub.f32 %v3035_v16, %v3049_v21  ;;  %v225_v32 = vsub.f32 %v3038_v17, %v3052_v22  ;;  %v3081_v35 = vand.u32 4294901760, %v86_v28  ;;  %v30_v41 = vld [vmem:[%s3544_s0 + $0x38] sm:$0xff]  ;;  %v21_v48 = vld [vmem:[%s3545_s1] sm:$0xff]  ;;  %v29_v49 = vld [vmem:[%s3544_s0 + $0x30] sm:$0xff] }
   0xa   :  { %2608 = vmatpush3.xpose.msra.mxu0 %v3019_v9  ;;  %v3084_v36 = vsub.f32 %v89_v19, %v3065_v27  ;;  %v232_v38 = vsub.f32 %v3055_v23, %v3075_v33  ;;  %v3090_v39 = vand.u32 4294901760, %v3069_v29  ;;  %v83_v40 = vsel %vm51_vm0, %v31_v34, 0  ;;  %v28_v57 = vld [vmem:[%s3544_s0 + $0x28] sm:$0xff]  ;;  %v27_v3 = vld [vmem:[%s3544_s0 + $0x20] sm:$0xff] }
   0xb   :  { %2609 = vmatprep.subr.mxu0 %v3021_v10  ;;  %v212_v30 = vand.u32 4294901760, %v211_v25  ;;  %v219_v31 = vand.u32 4294901760, %v218_v26  ;;  %v226_v37 = vand.u32 4294901760, %v225_v32  ;;  %v3101_v43 = vsub.f32 %v86_v28, %v3081_v35  ;;  %v40_v63 = vld [vmem:[%s3548_s4 + $0x8] sm:$0xff]  ;;  %v39_v14 = vld [vmem:[%s3548_s4] sm:$0xff]  ;;  %v26_v26 = vld [vmem:[%s3544_s0 + $0x18] sm:$0xff] }
   0xc   :  { %v3098_v42 = vand.u32 4294901760, %v3084_v36  ;;  %v233_v44 = vand.u32 4294901760, %v232_v38  ;;  %v239_v45 = vsub.f32 %v3069_v29, %v3090_v39  ;;  %v3106_v46 = vand.u32 4294901760, %v83_v40 }
   0xd   :  { %2640 = vmatprep.subr.mxu1 %v212_v30  ;;  %v80_v47 = vsel %vm51_vm0, %v30_v41, 0  ;;  %v3121_v52 = vand.u32 4294901760, %v3101_v43  ;;  %v53_v53 = vsel %vm51_vm0, %v21_v48, 0  ;;  %v77_v55 = vsel %vm51_vm0, %v29_v49, 0 }
   0xe   :  { %2610 = vmatpush3.xpose.msra.mxu0 %v3021_v10  ;;  %2641 = vmatpush3.xpose.msra.mxu1 %v212_v30  ;;  %v246_v50 = vsub.f32 %v3084_v36, %v3098_v42  ;;  %v3118_v51 = vand.u32 4294901760, %v80_v47  ;;  %v240_v54 = vand.u32 4294901760, %v239_v45  ;;  %v3127_v56 = vsub.f32 %v83_v40, %v3106_v46  ;;  %v25_v40 = vld [vmem:[%s3544_s0 + $0x10] sm:$0xff] }
   0xf   :  { %2611 = vmatprep.subr.mxu0 %v3027_v13  ;;  %2642 = vmatprep.subr.mxu1 %v219_v31  ;;  %v3132_v58 = vand.u32 4294901760, %v53_v53  ;;  %v3139_v61 = vand.u32 4294901760, %v77_v55  ;;  %v74_v62 = vsel %vm51_vm0, %v28_v57, 0  ;;  %v253_v0 = vsub.f32 %v3101_v43, %v3121_v52 }
  0x10   :  { %v247_v60 = vand.u32 4294901760, %v246_v50  ;;  %v3149_v1 = vand.u32 4294901760, %v3127_v56  ;;  %v3152_v2 = vsub.f32 %v80_v47, %v3118_v51  ;;  %v2967_v5 = vmov 0   ;;  %v24_v50 = vld [vmem:[%s3544_s0 + $0x8] sm:$0xff] }
  0x11   :  { %v3135_v59 = vsub.f32 %v53_v53, %v3132_v58  ;;  %2672 = vmatprep.mubr.f32.mxu1 %v3132_v58  ;;  %2943 = vset.pattern.permute.xlu0 %v2967_v5  ;;  %v3162_v7 = vand.u32 4294901760, %v74_v62  ;;  %v71_v11 = vsel %vm51_vm0, %v27_v3, 0  ;;  %v3166_v12 = vsub.f32 %v77_v55, %v3139_v61 }
  0x12   :  { %2612 = vmatpush3.xpose.msra.mxu0 %v3027_v13  ;;  %2643 = vmatpush3.xpose.msra.mxu1 %v219_v31  ;;  %v254_v19 = vand.u32 4294901760, %v253_v0  ;;  %v260_v24 = vsub.f32 %v3127_v56, %v3149_v1  ;;  %v3175_v25 = vand.u32 4294901760, %v3152_v2  ;;  %v3181_v30 = vand.u32 4294901760, %v71_v11  ;;  %v22_v0 = vld [vmem:[%s3545_s1 + $0x8] sm:$0xff] }
  0x13   :  { %2613 = vmatprep.subr.mxu0 %v3041_v18  ;;  %2644 = vmatprep.subr.mxu1 %v226_v37  ;;  %v189_v4 = vand.u32 4294901760, %v3135_v59  ;;  %v68_v31 = vsel %vm51_vm0, %v26_v26, 0  ;;  %v3191_v38 = vsub.f32 %v74_v62, %v3162_v7  ;;  %vm807_vm1 = vcmask 130048  }
  0x14   :  { %2944 = vset.pattern.permute.xlu1 %v2967_v5  ;;  %48 = vperm.xlu0 %2943, %v40_v63   ;;  %v261_v32 = vand.u32 4294901760, %v260_v24  ;;  %v267_v34 = vsub.f32 %v3152_v2, %v3175_v25  ;;  %v3197_v41 = vand.u32 4294901760, %v68_v31  ;;  %v3207_v49 = vsub.f32 %v71_v11, %v3181_v30  ;;  %v23_v63 = vld [vmem:[%s3544_s0] sm:$0xff] }
  0x15   :  { %v190_v6 = vsub.f32 %v3135_v59, %v189_v4  ;;  %v3204_v48 = vand.u32 4294901760, %v3191_v38  ;;  %v59_v5 = vsel %vm51_vm0, %v23_v63, 0 }
  0x16   :  { %2614 = vmatpush3.xpose.msra.mxu0 %v3041_v18  ;;  %2645 = vmatpush3.xpose.msra.mxu1 %v226_v37  ;;  %v3188_v37 = vand.u32 4294901760, %v3166_v12  ;;  %v268_v45 = vand.u32 4294901760, %v267_v34  ;;  %v3223_v62 = vsub.f32 %v68_v31, %v3197_v41 }
  0x17   :  { %2615 = vmatprep.subr.mxu0 %v3065_v27  ;;  %2646 = vmatprep.subr.mxu1 %v233_v44  ;;  %v191_v28 = vand.u32 4294901760, %v190_v6  ;;  %v281_v57 = vsub.f32 %v3191_v38, %v3204_v48  ;;  %v56_v6 = vsel %vm51_vm0, %v22_v0, 0 }
  0x18   :  { %43 = vperm.xlu0 %2943, %v39_v14   ;;  %v274_v47 = vsub.f32 %v3166_v12, %v3188_v37  ;;  %v3245_v26 = vand.u32 4294901760, %v56_v6 }
  0x19   :  { %2637 = vmatprep.mubr.f32.mxu0 %v191_v28  ;;  %v282_v11 = vand.u32 4294901760, %v281_v57  ;;  %v3248_v28 = vand.u32 4294901760, %v59_v5 }
  0x1a   :  { %2616 = vmatpush3.xpose.msra.mxu0 %v3065_v27  ;;  %2647 = vmatpush3.xpose.msra.mxu1 %v233_v44  ;;  %v65_v44 = vsel %vm51_vm0, %v25_v40, 0  ;;  %v275_v55 = vand.u32 4294901760, %v274_v47 }
  0x1b   :  { %2617 = vmatprep.subr.mxu0 %v3081_v35  ;;  %2648 = vmatprep.subr.mxu1 %v240_v54  ;;  %v3213_v53 = vand.u32 4294901760, %v65_v44 }
  0x1d   :  { %v3243_v24 = vsub.f32 %v65_v44, %v3213_v53  ;;  %v3260_v44 = vsub.f32 %v56_v6, %v3245_v26 }
  0x1e   :  { %2618 = vmatpush3.xpose.msra.mxu0 %v3081_v35  ;;  %2649 = vmatpush3.xpose.msra.mxu1 %v240_v54  ;;  %v62_v54 = vsel %vm51_vm0, %v24_v50, 0 }
  0x1f   :  { %2619 = vmatprep.subr.mxu0 %v3106_v46  ;;  %2650 = vmatprep.subr.mxu1 %v247_v60  ;;  %v3232_v3 = vand.u32 4294901760, %v62_v54  ;;  %v3254_v34 = vand.u32 4294901760, %v3243_v24 }
  0x21   :  { %v3257_v40 = vsub.f32 %v62_v54, %v3232_v3  ;;  %v302_v47 = vsub.f32 %v3243_v24, %v3254_v34  ;;  %v199_v54 = vand.u32 4294901760, %v3260_v44 }
  0x22   :  { %2620 = vmatpush3.xpose.msra.mxu0 %v3106_v46  ;;  %2651 = vmatpush3.xpose.msra.mxu1 %v247_v60  ;;  %v3220_v60 = vand.u32 4294901760, %v3207_v49 }
  0x23   :  { %2621 = vmatprep.subr.mxu0 %v3118_v51  ;;  %2652 = vmatprep.subr.mxu1 %v254_v19  ;;  %v3267_v50 = vand.u32 4294901760, %v3257_v40  ;;  %v303_v57 = vand.u32 4294901760, %v302_v47 }
  0x24   :  { %v288_v14 = vsub.f32 %v3207_v49, %v3220_v60 }
  0x25   :  { %v309_v63 = vsub.f32 %v3257_v40, %v3267_v50 }
  0x26   :  { %2622 = vmatpush3.xpose.msra.mxu0 %v3118_v51  ;;  %2653 = vmatpush3.xpose.msra.mxu1 %v254_v19  ;;  %v3240_v19 = vand.u32 4294901760, %v3223_v62  ;;  %v289_v31 = vand.u32 4294901760, %v288_v14 }
  0x27   :  { %2623 = vmatprep.subr.mxu0 %v3139_v61  ;;  %2654 = vmatprep.subr.mxu1 %v261_v32  ;;  %v310_v6 = vand.u32 4294901760, %v309_v63 }
  0x2a   :  { %2624 = vmatpush3.xpose.msra.mxu0 %v3139_v61  ;;  %2655 = vmatpush3.xpose.msra.mxu1 %v261_v32  ;;  %v295_v32 = vsub.f32 %v3223_v62, %v3240_v19 }
  0x2b   :  { %2625 = vmatprep.subr.mxu0 %v3162_v7  ;;  %2656 = vmatprep.subr.mxu1 %v268_v45 }
  0x2e   :  { %2626 = vmatpush3.xpose.msra.mxu0 %v3162_v7  ;;  %2657 = vmatpush3.xpose.msra.mxu1 %v268_v45  ;;  %v296_v45 = vand.u32 4294901760, %v295_v32  ;;  %v2419_v32 = vld [vmem:[%s3548_s4 + $0x28] sm:$0xff] }
  0x2f   :  { %2627 = vmatprep.subr.mxu0 %v3181_v30  ;;  %2658 = vmatprep.subr.mxu1 %v275_v55 }
  0x30   :  { %1331 = vperm.xlu0 %2943, %v2419_v32  }
  0x32   :  { %2628 = vmatpush3.xpose.msra.mxu0 %v3181_v30  ;;  %2659 = vmatpush3.xpose.msra.mxu1 %v275_v55  ;;  %v3270_v55 = vsub.f32 %v59_v5, %v3248_v28  ;;  %v200_v5 = vsub.f32 %v3260_v44, %v199_v54 }
  0x33   :  { %2629 = vmatprep.subr.mxu0 %v3197_v41  ;;  %2660 = vmatprep.subr.mxu1 %v282_v11 }
  0x34   :  { %v3278_v0 = vand.u32 4294901760, %v3270_v55  ;;  %v201_v14 = vand.u32 4294901760, %v200_v5 }
  0x36   :  { %2630 = vmatpush3.xpose.msra.mxu0 %v3197_v41  ;;  %2661 = vmatpush3.xpose.msra.mxu1 %v282_v11  ;;  %v316_v11 = vsub.f32 %v3270_v55, %v3278_v0 }
  0x37   :  { %2631 = vmatprep.subr.mxu0 %v3213_v53  ;;  %2662 = vmatprep.subr.mxu1 %v289_v31 }
  0x3a   :  { %2632 = vmatpush3.xpose.msra.mxu0 %v3213_v53  ;;  %2663 = vmatpush3.xpose.msra.mxu1 %v289_v31  ;;  %v317_v31 = vand.u32 4294901760, %v316_v11  ;;  %v2416_v11 = vld [vmem:[%s3546_s2 + $0x10] sm:$0xff] }
  0x3b   :  { %2633 = vmatprep.subr.mxu0 %v3232_v3  ;;  %2664 = vmatprep.subr.mxu1 %v296_v45 }
  0x3e   :  { %2634 = vmatpush3.xpose.msra.mxu0 %v3232_v3  ;;  %2665 = vmatpush3.xpose.msra.mxu1 %v296_v45 }
  0x3f   :  { %2635 = vmatprep.subr.mxu0 %v3248_v28  ;;  %2666 = vmatprep.subr.mxu1 %v303_v57 }
  0x42   :  { %2636 = vmatpush3.xpose.msra.mxu0 %v3248_v28  ;;  %2667 = vmatpush3.xpose.msra.mxu1 %v303_v57 }
  0x43   :  { %2668 = vmatprep.subr.mxu1 %v310_v6  ;;  %2675 = vmatprep.subr.mxu0 %v3032_v15 }
  0x45   :  { %2638 = vmatmul.mubr.f32.vlgmr.msra.gmra.mxu0 %v201_v14  ;;  %v1335_v14 = vsel %vm807_vm1, %v2416_v11, 0 }
  0x46   :  { %2669 = vmatpush3.xpose.msra.mxu1 %v310_v6  ;;  %2676 = vmatpush3.xpose.msra.mxu0 %v3032_v15  ;;  %v2422_v15 = vld [vmem:[%s3548_s4 + $0x30] sm:$0xff] }
  0x47   :  { %2670 = vmatprep.subr.mxu1 %v317_v31  ;;  %2677 = vmatprep.subr.mxu0 %v3035_v16 }
  0x48   :  { %2707 = vmatprep.mubr.f32.mxu0 %v3135_v59  ;;  %1852 = vperm.xlu0 %2943, %v2422_v15  }
  0x4a   :  { %2671 = vmatpush3.xpose.msra.mxu1 %v317_v31  ;;  %2678 = vmatpush3.xpose.msra.mxu0 %v3035_v16  ;;  %v2370_v16 = vld [vmem:[%s3547_s3] sm:$0xff]  ;;  %v3487_v31 = vand.u32 4294901760, %v1335_v14 }
  0x4b   :  { %2679 = vmatprep.subr.mxu0 %v3038_v17  ;;  %2710 = vmatprep.subr.mxu1 %v3017_v8 }
  0x4c   :  { %2374 = vperm.xlu0 %2943, %v2370_v16   ;;  %v3490_v32 = vsub.f32 %v1335_v14, %v3487_v31 }
  0x4d   :  { %2673 = vmatmul.mubr.f32.vlgmr.msra.gmra.mxu1 %v3245_v26 }
  0x4e   :  { %2680 = vmatpush3.xpose.msra.mxu0 %v3038_v17  ;;  %2711 = vmatpush3.xpose.msra.mxu1 %v3017_v8  ;;  %v2424_v17 = vld [vmem:[%s3548_s4 + $0x40] sm:$0xff]  ;;  %v1409_v15 = vand.u32 4294901760, %v3490_v32 }
  0x4f   :  { %2681 = vmatprep.subr.mxu0 %v3055_v23  ;;  %2712 = vmatprep.subr.mxu1 %v3019_v9 }
  0x50   :  { %2742 = vmatprep.mubr.f32.mxu1 %v189_v4  ;;  %2395 = vperm.xlu0 %2943, %v2424_v17   ;;  %v1410_v16 = vsub.f32 %v3490_v32, %v1409_v15 }
  0x52   :  { %2682 = vmatpush3.xpose.msra.mxu0 %v3055_v23  ;;  %2713 = vmatpush3.xpose.msra.mxu1 %v3019_v9  ;;  %v2414_v23 = vld [vmem:[%s3548_s4 + $0x10] sm:$0xff]  ;;  %v1411_v17 = vand.u32 4294901760, %v1410_v16 }
  0x53   :  { %2683 = vmatprep.subr.mxu0 %v3069_v29  ;;  %2714 = vmatprep.subr.mxu1 %v3021_v10 }
  0x56   :  { %2684 = vmatpush3.xpose.msra.mxu0 %v3069_v29  ;;  %2715 = vmatpush3.xpose.msra.mxu1 %v3021_v10  ;;  %v2423_v29 = vld [vmem:[%s3548_s4 + $0x38] sm:$0xff] }
  0x57   :  { %2685 = vmatprep.subr.mxu0 %v3084_v36  ;;  %2716 = vmatprep.subr.mxu1 %v3027_v13 }
  0x5a   :  { %2686 = vmatpush3.xpose.msra.mxu0 %v3084_v36  ;;  %2717 = vmatpush3.xpose.msra.mxu1 %v3027_v13 }
  0x5b   :  { %2687 = vmatprep.subr.mxu0 %v3101_v43  ;;  %2718 = vmatprep.subr.mxu1 %v3041_v18 }
  0x5e   :  { %2688 = vmatpush3.xpose.msra.mxu0 %v3101_v43  ;;  %2719 = vmatpush3.xpose.msra.mxu1 %v3041_v18 }
  0x5f   :  { %2689 = vmatprep.subr.mxu0 %v3127_v56  ;;  %2720 = vmatprep.subr.mxu1 %v3065_v27 }
  0x62   :  { %2690 = vmatpush3.xpose.msra.mxu0 %v3127_v56  ;;  %2721 = vmatpush3.xpose.msra.mxu1 %v3065_v27 }
  0x63   :  { %2691 = vmatprep.subr.mxu0 %v3152_v2  ;;  %2722 = vmatprep.subr.mxu1 %v3081_v35 }
  0x66   :  { %2692 = vmatpush3.xpose.msra.mxu0 %v3152_v2  ;;  %2723 = vmatpush3.xpose.msra.mxu1 %v3081_v35 }
  0x67   :  { %2693 = vmatprep.subr.mxu0 %v3166_v12  ;;  %2724 = vmatprep.subr.mxu1 %v3106_v46 }
  0x6a   :  { %2694 = vmatpush3.xpose.msra.mxu0 %v3166_v12  ;;  %2725 = vmatpush3.xpose.msra.mxu1 %v3106_v46 }
  0x6b   :  { %2695 = vmatprep.subr.mxu0 %v3191_v38  ;;  %2726 = vmatprep.subr.mxu1 %v3118_v51 }
  0x6e   :  { %2696 = vmatpush3.xpose.msra.mxu0 %v3191_v38  ;;  %2727 = vmatpush3.xpose.msra.mxu1 %v3118_v51 }
  0x6f   :  { %2697 = vmatprep.subr.mxu0 %v3207_v49  ;;  %2728 = vmatprep.subr.mxu1 %v3139_v61 }
  0x72   :  { %2698 = vmatpush3.xpose.msra.mxu0 %v3207_v49  ;;  %2729 = vmatpush3.xpose.msra.mxu1 %v3139_v61 }
  0x73   :  { %2699 = vmatprep.subr.mxu0 %v3223_v62  ;;  %2730 = vmatprep.subr.mxu1 %v3162_v7 }
  0x76   :  { %2700 = vmatpush3.xpose.msra.mxu0 %v3223_v62  ;;  %2731 = vmatpush3.xpose.msra.mxu1 %v3162_v7 }
  0x77   :  { %2701 = vmatprep.subr.mxu0 %v3243_v24  ;;  %2732 = vmatprep.subr.mxu1 %v3181_v30 }
  0x7a   :  { %2702 = vmatpush3.xpose.msra.mxu0 %v3243_v24  ;;  %2733 = vmatpush3.xpose.msra.mxu1 %v3181_v30 }
  0x7b   :  { %2703 = vmatprep.subr.mxu0 %v3257_v40  ;;  %2734 = vmatprep.subr.mxu1 %v3197_v41 }
  0x7e   :  { %2704 = vmatpush3.xpose.msra.mxu0 %v3257_v40  ;;  %2735 = vmatpush3.xpose.msra.mxu1 %v3197_v41 }
  0x7f   :  { %2705 = vmatprep.subr.mxu0 %v3270_v55  ;;  %2736 = vmatprep.subr.mxu1 %v3213_v53 }
  0x82   :  { %2706 = vmatpush3.xpose.msra.mxu0 %v3270_v55  ;;  %2737 = vmatpush3.xpose.msra.mxu1 %v3213_v53 }
  0x83   :  { %2738 = vmatprep.subr.mxu1 %v3232_v3  ;;  %2745 = vmatprep.subr.mxu0 %v3046_v20 }
  0x85   :  { %2708 = vmatmul.mubr.f32.vlgmr.msra.gmra.mxu0 %v3260_v44 }
  0x86   :  { %2739 = vmatpush3.xpose.msra.mxu1 %v3232_v3  ;;  %2746 = vmatpush3.xpose.msra.mxu0 %v3046_v20 }
  0x87   :  { %2740 = vmatprep.subr.mxu1 %v3248_v28  ;;  %2747 = vmatprep.subr.mxu0 %v3049_v21 }
  0x88   :  { %2777 = vmatprep.mubr.f32.mxu0 %v3132_v58 }
  0x8a   :  { %2741 = vmatpush3.xpose.msra.mxu1 %v3248_v28  ;;  %2748 = vmatpush3.xpose.msra.mxu0 %v3049_v21 }
  0x8b   :  { %2749 = vmatprep.subr.mxu0 %v3052_v22  ;;  %2780 = vmatprep.subr.mxu1 %v3017_v8 }
  0x8d   :  { %2743 = vmatmul.mubr.f32.vlgmr.msra.gmra.mxu1 %v199_v54 }
  0x8e   :  { %2750 = vmatpush3.xpose.msra.mxu0 %v3052_v22  ;;  %2781 = vmatpush3.xpose.msra.mxu1 %v3017_v8  ;;  %v792_v8 = vld [vmem:[%s3546_s2] sm:$0xff]  ;;  %v2415_v22 = vld [vmem:[%s3548_s4 + $0x18] sm:$0xff] }
  0x8f   :  { %2751 = vmatprep.subr.mxu0 %v3075_v33  ;;  %2782 = vmatprep.subr.mxu1 %v3019_v9 }
  0x90   :  { %2812 = vmatprep.mubr.f32.mxu1 %v3132_v58  ;;  %804 = vperm.xlu1 %2944, %v2415_v22  }
  0x92   :  { %2752 = vmatpush3.xpose.msra.mxu0 %v3075_v33  ;;  %2783 = vmatpush3.xpose.msra.mxu1 %v3019_v9  ;;  %v809_v9 = vsel %vm807_vm1, %v792_v8, 0  ;;  %v2371_v33 = vld [vmem:[%s3547_s3 + $0x8] sm:$0xff] }
  0x93   :  { %2753 = vmatprep.subr.mxu0 %v3090_v39  ;;  %2784 = vmatprep.subr.mxu1 %v3021_v10 }
  0x94   :  { %799 = vperm.xlu1 %2944, %v2414_v23  }
  0x96   :  { %2754 = vmatpush3.xpose.msra.mxu0 %v3090_v39  ;;  %2785 = vmatpush3.xpose.msra.mxu1 %v3021_v10  ;;  %v3443_v10 = vand.u32 4294901760, %v809_v9  ;;  %v793_v39 = vld [vmem:[%s3546_s2 + $0x8] sm:$0xff] }
  0x97   :  { %2755 = vmatprep.subr.mxu0 %v3098_v42  ;;  %2786 = vmatprep.subr.mxu1 %v3027_v13 }
  0x9a   :  { %2756 = vmatpush3.xpose.msra.mxu0 %v3098_v42  ;;  %2787 = vmatpush3.xpose.msra.mxu1 %v3027_v13  ;;  %v3446_v13 = vsub.f32 %v809_v9, %v3443_v10 }
  0x9b   :  { %2757 = vmatprep.subr.mxu0 %v3121_v52  ;;  %2788 = vmatprep.subr.mxu1 %v3041_v18 }
  0x9e   :  { %2758 = vmatpush3.xpose.msra.mxu0 %v3121_v52  ;;  %2789 = vmatpush3.xpose.msra.mxu1 %v3041_v18  ;;  %v883_v18 = vand.u32 4294901760, %v3446_v13  ;;  %v812_v52 = vsel %vm807_vm1, %v793_v39, 0 }
  0x9f   :  { %2759 = vmatprep.subr.mxu0 %v3149_v1  ;;  %2790 = vmatprep.subr.mxu1 %v3065_v27 }
  0xa0   :  { %v884_v20 = vsub.f32 %v3446_v13, %v883_v18 }
  0xa2   :  { %2760 = vmatpush3.xpose.msra.mxu0 %v3149_v1  ;;  %2791 = vmatpush3.xpose.msra.mxu1 %v3065_v27  ;;  %v885_v21 = vand.u32 4294901760, %v884_v20  ;;  %v2418_v27 = vld [vmem:[%s3548_s4 + $0x20] sm:$0xff] }
  0xa3   :  { %2761 = vmatprep.subr.mxu0 %v3175_v25  ;;  %2792 = vmatprep.subr.mxu1 %v3081_v35 }
  0xa4   :  { %1326 = vperm.xlu1 %2944, %v2418_v27  }
  0xa6   :  { %2762 = vmatpush3.xpose.msra.mxu0 %v3175_v25  ;;  %2793 = vmatpush3.xpose.msra.mxu1 %v3081_v35  ;;  %v49_v35 = vpop.permute.xlu0 %48 }
  0xa7   :  { %2763 = vmatprep.subr.mxu0 %v3188_v37  ;;  %2794 = vmatprep.subr.mxu1 %v3106_v46 }
  0xa8   :  { %1857 = vperm.xlu1 %2944, %v2423_v29  }
  0xaa   :  { %2764 = vmatpush3.xpose.msra.mxu0 %v3188_v37  ;;  %2795 = vmatpush3.xpose.msra.mxu1 %v3106_v46  ;;  %v44_v46 = vpop.permute.xlu0 %43 }
  0xab   :  { %2765 = vmatprep.subr.mxu0 %v3204_v48  ;;  %2796 = vmatprep.subr.mxu1 %v3118_v51 }
  0xac   :  { %2379 = vperm.xlu1 %2944, %v2371_v33  }
  0xae   :  { %2766 = vmatpush3.xpose.msra.mxu0 %v3204_v48  ;;  %2797 = vmatpush3.xpose.msra.mxu1 %v3118_v51  ;;  %v1332_v11 = vpop.permute.xlu0 %1331 }
  0xaf   :  { %2767 = vmatprep.subr.mxu0 %v3220_v60  ;;  %2798 = vmatprep.subr.mxu1 %v3139_v61 }
  0xb2   :  { %2768 = vmatpush3.xpose.msra.mxu0 %v3220_v60  ;;  %2799 = vmatpush3.xpose.msra.mxu1 %v3139_v61  ;;  %v3472_v61 = vand.u32 4294901760, %v812_v52 }
  0xb3   :  { %2769 = vmatprep.subr.mxu0 %v3240_v19  ;;  %2800 = vmatprep.subr.mxu1 %v3162_v7 }
  0xb6   :  { %2770 = vmatpush3.xpose.msra.mxu0 %v3240_v19  ;;  %2801 = vmatpush3.xpose.msra.mxu1 %v3162_v7 }
  0xb7   :  { %2771 = vmatprep.subr.mxu0 %v3254_v34  ;;  %2802 = vmatprep.subr.mxu1 %v3181_v30 }
  0xba   :  { %2772 = vmatpush3.xpose.msra.mxu0 %v3254_v34  ;;  %2803 = vmatpush3.xpose.msra.mxu1 %v3181_v30  ;;  %v892_v30 = vsub.f32 %v812_v52, %v3472_v61 }
  0xbb   :  { %2773 = vmatprep.subr.mxu0 %v3267_v50  ;;  %2804 = vmatprep.subr.mxu1 %v3197_v41 }
  0xbc   :  { %v893_v60 = vand.u32 4294901760, %v892_v30 }
  0xbe   :  { %2774 = vmatpush3.xpose.msra.mxu0 %v3267_v50  ;;  %2805 = vmatpush3.xpose.msra.mxu1 %v3197_v41  ;;  %v894_v34 = vsub.f32 %v892_v30, %v893_v60 }
  0xbf   :  { %2775 = vmatprep.subr.mxu0 %v3278_v0  ;;  %2806 = vmatprep.subr.mxu1 %v3213_v53 }
  0xc0   :  { %v895_v50 = vand.u32 4294901760, %v894_v34 }
  0xc2   :  { %2776 = vmatpush3.xpose.msra.mxu0 %v3278_v0  ;;  %2807 = vmatpush3.xpose.msra.mxu1 %v3213_v53 }
  0xc3   :  { %2808 = vmatprep.subr.mxu1 %v3232_v3 }
  0xc5   :  { %2778 = vmatmul.mubr.f32.vlgmr.msra.gmra.mxu0 %v3245_v26 }
  0xc6   :  { %2809 = vmatpush3.xpose.msra.mxu1 %v3232_v3  ;;  %2819 = vmatprep.mubr.f32.mxu0 %v885_v21 }
  0xc7   :  { %2810 = vmatprep.subr.mxu1 %v3248_v28 }
  0xca   :  { %2811 = vmatpush3.xpose.msra.mxu1 %v3248_v28 }
  0xcd   :  { %2813 = vmatmul.mubr.f32.vlgmr.msra.gmra.mxu1 %v3245_v26 }
  0xce   :  { %2826 = vmatprep.mubr.f32.mxu1 %v3443_v10 }
 0x105   :  { %v2639_v36 = vpop.f32.mrf.mxu0 }
 0x106   :  { %v204_v56 = vadd.f32 %v2639_v36, %v49_v35 }
 0x107   :  { %v193_v42 = vpop.f32.mrf.mxu0 }
 0x108   :  { %v194_v59 = vadd.f32 %v193_v42, %v44_v46 }
 0x10b   :  { %v805_v9 = vpop.permute.xlu1 %804 }
 0x10d   :  { %v2674_v43 = vpop.f32.mrf.mxu1 }
 0x10e   :  { %v361_v4 = vadd.f32 %v2674_v43, %v204_v56 }
 0x10f   :  { %v354_v58 = vpop.f32.mrf.mxu1  ;;  %v800_v22 = vpop.permute.xlu1 %799 }
 0x110   :  { %v355_v12 = vadd.f32 %v354_v58, %v194_v59 }
 0x145   :  { %v2709_v51 = vpop.f32.mrf.mxu0 }
 0x146   :  { %v472_v25 = vadd.f32 %v2709_v51, %v361_v4 }
 0x147   :  { %v464_v1 = vpop.f32.mrf.mxu0 }
 0x148   :  { %v465_v38 = vadd.f32 %v464_v1, %v355_v12 }
 0x14d   :  { %v2744_v2 = vpop.f32.mrf.mxu1 }
 0x14e   :  { %v569_v41 = vadd.f32 %v2744_v2, %v472_v25 }
 0x14f   :  { %v560_v37 = vpop.f32.mrf.mxu1 }
 0x150   :  { %v561_v49 = vadd.f32 %v560_v37, %v465_v38 }
 0x185   :  { %v2779_v7 = vpop.f32.mrf.mxu0 }
 0x186   :  { %v694_v53 = vadd.f32 %v2779_v7, %v569_v41 }
 0x187   :  { %v687_v48 = vpop.f32.mrf.mxu0 }
 0x188   :  { %v688_v3 = vadd.f32 %v687_v48, %v561_v49 }
 0x18d   :  { %v2814_v62 = vpop.f32.mrf.mxu1 }
 0x18e   :  { %v787_v19 = vadd.f32 %v2814_v62, %v694_v53 }
 0x18f   :  { %v780_v24 = vpop.f32.mrf.mxu1 }
 0x190   :  { %v791_v26 = vmax.f32 %v787_v19, 0.0  ;;  %v781_v28 = vadd.f32 %v780_v24, %v688_v3 }
 0x192   :  { %v843_v40 = vand.u32 4294901760, %v791_v26  ;;  %v790_v44 = vmax.f32 %v781_v28, 0.0 }
 0x194   :  { %v931_v45 = vsub.f32 %v791_v26, %v843_v40  ;;  %v846_v47 = vand.u32 4294901760, %v790_v44  ;;  %2815 = vmatprep.subr.mxu0 %v843_v40 }
 0x195   :  { %2816 = vmatpush3.msra.mxu0 %v843_v40 }
 0x196   :  { %v938_v55 = vsub.f32 %v790_v44, %v846_v47  ;;  %2817 = vmatprep.subr.mxu0 %v846_v47  ;;  %v932_v54 = vand.u32 4294901760, %v931_v45 }
 0x197   :  { %2818 = vmatpush3.msra.mxu0 %v846_v47 }
 0x198   :  { %2829 = vmatprep.subr.mxu0 %v931_v45  ;;  %2820 = vmatmul.mubr.f32.vlgmr.msra.gmra.mxu0 %v895_v50  ;;  %v933_v57 = vsub.f32 %v931_v45, %v932_v54  ;;  %v939_v63 = vand.u32 4294901760, %v938_v55 }
 0x199   :  { %2830 = vmatpush3.msra.mxu0 %v931_v45  ;;  %2833 = vmatprep.mubr.f32.mxu0 %v3446_v13 }
 0x19a   :  { %2831 = vmatprep.subr.mxu0 %v938_v55  ;;  %v934_v0 = vand.u32 4294901760, %v933_v57  ;;  %v940_v5 = vsub.f32 %v938_v55, %v939_v63 }
 0x19b   :  { %2832 = vmatpush3.msra.mxu0 %v938_v55 }
 0x19c   :  { %2822 = vmatprep.subr.mxu1 %v934_v0  ;;  %2843 = vmatprep.subr.mxu0 %v932_v54  ;;  %v941_v6 = vand.u32 4294901760, %v940_v5 }
 0x19d   :  { %2823 = vmatpush3.msra.mxu1 %v934_v0  ;;  %2834 = vmatmul.mubr.f32.vlgmr.msra.gmra.mxu0 %v892_v30 }
 0x19e   :  { %2844 = vmatpush3.msra.mxu0 %v932_v54  ;;  %2824 = vmatprep.subr.mxu1 %v941_v6 }
 0x19f   :  { %2845 = vmatprep.subr.mxu0 %v939_v63  ;;  %2825 = vmatpush3.msra.mxu1 %v941_v6 }
 0x1a0   :  { %2846 = vmatpush3.msra.mxu0 %v939_v63  ;;  %2827 = vmatmul.mubr.f32.vlgmr.msra.gmra.mxu1 %v3472_v61  ;;  %v2421_v63 = vld [vmem:[%s3546_s2 + $0x28] sm:$0xff] }
 0x1a1   :  { %2836 = vmatprep.subr.mxu1 %v843_v40  ;;  %2840 = vmatprep.mubr.f32.mxu1 %v883_v18  ;;  %v1864_v6 = vsel %vm807_vm1, %v2421_v63, 0 }
 0x1a2   :  { %2837 = vmatpush3.msra.mxu1 %v843_v40  ;;  %2847 = vmatprep.mubr.f32.mxu0 %v3443_v10 }
 0x1a3   :  { %2838 = vmatprep.subr.mxu1 %v846_v47  ;;  %2848 = vmatmul.mubr.f32.vlgmr.msra.gmra.mxu0 %v3472_v61 }
 0x1a4   :  { %2839 = vmatpush3.msra.mxu1 %v846_v47  ;;  %2861 = vmatprep.mubr.f32.mxu0 %v1411_v17 }
 0x1a5   :  { %2841 = vmatmul.mubr.f32.vlgmr.msra.gmra.mxu1 %v893_v60  ;;  %2850 = vmatprep.subr.mxu1 %v843_v40 }
 0x1a6   :  { %2851 = vmatpush3.msra.mxu1 %v843_v40  ;;  %2854 = vmatprep.mubr.f32.mxu1 %v3443_v10  ;;  %v2417_v10 = vld [vmem:[%s3546_s2 + $0x18] sm:$0xff]  ;;  %v2420_v40 = vld [vmem:[%s3546_s2 + $0x20] sm:$0xff]  ;;  %s2968_s2 = smov [#allocation2]  }
 0x1a7   :  { %2852 = vmatprep.subr.mxu1 %v846_v47  ;;  %v1338_v20 = vsel %vm807_vm1, %v2417_v10, 0  ;;  %v1861_v44 = vsel %vm807_vm1, %v2420_v40, 0  ;;  %s2406_s1 = sshll.u32 %s2968_s2, 4  ;;  %s2407_s1 = int_to_ptr.vmem [resolvable:$true] %s2406_s1 }
 0x1a8   :  { %2853 = vmatpush3.msra.mxu1 %v846_v47  ;;  %v3501_v27 = vand.u32 4294901760, %v1338_v20  ;;  %v3516_v45 = vand.u32 4294901760, %v1861_v44  ;;  %s2945_s8 = scalar_lea.vmem %s2407_s1, 16  ;;  %s2949_s9 = scalar_lea.vmem %s2407_s1, 32 }
 0x1a9   :  { %2855 = vmatmul.mubr.f32.vlgmr.msra.gmra.mxu1 %v3472_v61  ;;  %p2946_p0 = scmp.ne.s32.totalorder %s2407_s1, %s2945_s8  ;;  %p2950_p1 = scmp.lt.s32.totalorder %s2407_s1, %s2407_s1 }
 0x1aa   :  { %2868 = vmatprep.mubr.f32.mxu1 %v3487_v31  ;;  %v1418_v43 = vsub.f32 %v1338_v20, %v3501_v27  ;;  %v3519_v47 = vsub.f32 %v1861_v44, %v3516_v45  ;;  %p2951_p2 = scmp.lt.s32.totalorder %s2949_s9, %s2945_s8 }
 0x1ac   :  { %v1419_v1 = vand.u32 4294901760, %v1418_v43  ;;  %v1935_v50 = vand.u32 4294901760, %v3519_v47  ;;  %p2952_p3 = por %p2951_p2, %p2950_p1 }
 0x1ae   :  { %v1420_v38 = vsub.f32 %v1418_v43, %v1419_v1  ;;  %v1936_v55 = vsub.f32 %v3519_v47, %v1935_v50  ;;  %p2953_p4 = pnand %p2952_p3, %p2946_p0 }
 0x1b0   :  { %v1421_v60 = vand.u32 4294901760, %v1420_v38  ;;  %v1937_v54 = vand.u32 4294901760, %v1936_v55 }
 0x258   :  { %v2821_v8 = vpop.f32.mrf.mxu0 }
 0x259   :  { %v898_v21 = vadd.f32 %v2821_v8, %v805_v9 }
 0x25a   :  { %v887_v13 = vpop.f32.mrf.mxu0 }
 0x25b   :  { %v888_v29 = vadd.f32 %v887_v13, %v800_v22 }
 0x25d   :  { %v2835_v18 = vpop.f32.mrf.mxu0 }
 0x25f   :  { %v1060_v35 = vpop.f32.mrf.mxu0 }
 0x260   :  { %v2828_v23 = vpop.f32.mrf.mxu1 }
 0x261   :  { %v985_v33 = vadd.f32 %v2828_v23, %v898_v21 }
 0x262   :  { %v978_v36 = vpop.f32.mrf.mxu1 }
 0x263   :  { %v1068_v39 = vadd.f32 %v2835_v18, %v985_v33  ;;  %v979_v42 = vadd.f32 %v978_v36, %v888_v29  ;;  %v2849_v52 = vpop.f32.mrf.mxu0 }
 0x265   :  { %v1061_v46 = vadd.f32 %v1060_v35, %v979_v42  ;;  %v2842_v51 = vpop.f32.mrf.mxu1  ;;  %v1227_v2 = vpop.f32.mrf.mxu0 }
 0x266   :  { %v1151_v56 = vadd.f32 %v2842_v51, %v1068_v39 }
 0x267   :  { %v1142_v58 = vpop.f32.mrf.mxu1 }
 0x268   :  { %v1234_v59 = vadd.f32 %v2849_v52, %v1151_v56  ;;  %v1143_v61 = vadd.f32 %v1142_v58, %v1061_v46 }
 0x269   :  { %v2856_v4 = vpop.f32.mrf.mxu1 }
 0x26a   :  { %v1228_v7 = vadd.f32 %v1227_v2, %v1143_v61  ;;  %v1313_v12 = vadd.f32 %v2856_v4, %v1234_v59 }
 0x26b   :  { %v1306_v25 = vpop.f32.mrf.mxu1 }
 0x26c   :  { %v1317_v30 = vmax.f32 %v1313_v12, 0.0  ;;  %v1307_v37 = vadd.f32 %v1306_v25, %v1228_v7 }
 0x26e   :  { %v1369_v41 = vand.u32 4294901760, %v1317_v30  ;;  %v1316_v48 = vmax.f32 %v1307_v37, 0.0 }
 0x270   :  { %v1457_v49 = vsub.f32 %v1317_v30, %v1369_v41  ;;  %v1372_v53 = vand.u32 4294901760, %v1316_v48  ;;  %2857 = vmatprep.subr.mxu0 %v1369_v41 }
 0x271   :  { %2858 = vmatpush3.msra.mxu0 %v1369_v41 }
 0x272   :  { %v1464_v62 = vsub.f32 %v1316_v48, %v1372_v53  ;;  %2859 = vmatprep.subr.mxu0 %v1372_v53  ;;  %v1458_v3 = vand.u32 4294901760, %v1457_v49 }
 0x273   :  { %2860 = vmatpush3.msra.mxu0 %v1372_v53 }
 0x274   :  { %2862 = vmatmul.mubr.f32.vlgmr.msra.gmra.mxu0 %v1421_v60  ;;  %2871 = vmatprep.subr.mxu0 %v1457_v49  ;;  %v1459_v19 = vsub.f32 %v1457_v49, %v1458_v3  ;;  %v1465_v24 = vand.u32 4294901760, %v1464_v62 }
 0x275   :  { %2872 = vmatpush3.msra.mxu0 %v1457_v49  ;;  %2875 = vmatprep.mubr.f32.mxu0 %v3490_v32 }
 0x276   :  { %2873 = vmatprep.subr.mxu0 %v1464_v62  ;;  %v1460_v26 = vand.u32 4294901760, %v1459_v19  ;;  %v1466_v28 = vsub.f32 %v1464_v62, %v1465_v24 }
 0x277   :  { %2874 = vmatpush3.msra.mxu0 %v1464_v62  ;;  %v1853_v62 = vpop.permute.xlu0 %1852 }
 0x278   :  { %2864 = vmatprep.subr.mxu1 %v1460_v26  ;;  %2885 = vmatprep.subr.mxu0 %v1458_v3  ;;  %v1467_v34 = vand.u32 4294901760, %v1466_v28 }
 0x279   :  { %2865 = vmatpush3.msra.mxu1 %v1460_v26  ;;  %2876 = vmatmul.mubr.f32.vlgmr.msra.gmra.mxu0 %v1418_v43 }
 0x27a   :  { %2886 = vmatpush3.msra.mxu0 %v1458_v3  ;;  %2866 = vmatprep.subr.mxu1 %v1467_v34 }
 0x27b   :  { %2887 = vmatprep.subr.mxu0 %v1465_v24  ;;  %2867 = vmatpush3.msra.mxu1 %v1467_v34 }
 0x27c   :  { %2888 = vmatpush3.msra.mxu0 %v1465_v24  ;;  %2869 = vmatmul.mubr.f32.vlgmr.msra.gmra.mxu1 %v3501_v27 }
 0x27d   :  { %2878 = vmatprep.subr.mxu1 %v1369_v41  ;;  %2882 = vmatprep.mubr.f32.mxu1 %v1409_v15  ;;  %v3530_v15 = vand.u32 4294901760, %v1864_v6 }
 0x27e   :  { %2879 = vmatpush3.msra.mxu1 %v1369_v41  ;;  %2889 = vmatprep.mubr.f32.mxu0 %v3487_v31 }
 0x27f   :  { %2880 = vmatprep.subr.mxu1 %v1372_v53  ;;  %2890 = vmatmul.mubr.f32.vlgmr.msra.gmra.mxu0 %v3501_v27  ;;  %v1944_v18 = vsub.f32 %v1864_v6, %v3530_v15 }
 0x280   :  { %2881 = vmatpush3.msra.mxu1 %v1372_v53  ;;  %2903 = vmatprep.mubr.f32.mxu0 %v1937_v54 }
 0x281   :  { %2883 = vmatmul.mubr.f32.vlgmr.msra.gmra.mxu1 %v1419_v1  ;;  %2892 = vmatprep.subr.mxu1 %v1369_v41  ;;  %v1945_v35 = vand.u32 4294901760, %v1944_v18 }
 0x282   :  { %2893 = vmatpush3.msra.mxu1 %v1369_v41  ;;  %2896 = vmatprep.mubr.f32.mxu1 %v3487_v31  ;;  %v1327_v31 = vpop.permute.xlu1 %1326 }
 0x283   :  { %2894 = vmatprep.subr.mxu1 %v1372_v53  ;;  %v1946_v56 = vsub.f32 %v1944_v18, %v1945_v35 }
 0x284   :  { %2895 = vmatpush3.msra.mxu1 %v1372_v53 }
 0x285   :  { %2897 = vmatmul.mubr.f32.vlgmr.msra.gmra.mxu1 %v3501_v27  ;;  %v1947_v2 = vand.u32 4294901760, %v1946_v56 }
 0x286   :  { %2910 = vmatprep.mubr.f32.mxu1 %v3516_v45  ;;  %v1858_v53 = vpop.permute.xlu1 %1857 }
 0x334   :  { %v2863_v57 = vpop.f32.mrf.mxu0 }
 0x335   :  { %v1424_v14 = vadd.f32 %v2863_v57, %v1332_v11 }
 0x336   :  { %v1413_v0 = vpop.f32.mrf.mxu0 }
 0x337   :  { %v1414_v16 = vadd.f32 %v1413_v0, %v1327_v31 }
 0x339   :  { %v2877_v5 = vpop.f32.mrf.mxu0 }
 0x33b   :  { %v1586_v8 = vpop.f32.mrf.mxu0 }
 0x33c   :  { %v2870_v32 = vpop.f32.mrf.mxu1 }
 0x33d   :  { %v1511_v17 = vadd.f32 %v2870_v32, %v1424_v14 }
 0x33e   :  { %v1504_v9 = vpop.f32.mrf.mxu1 }
 0x33f   :  { %v1594_v10 = vadd.f32 %v2877_v5, %v1511_v17  ;;  %v1505_v13 = vadd.f32 %v1504_v9, %v1414_v16  ;;  %v2891_v22 = vpop.f32.mrf.mxu0  ;;  %v2380_v16 = vpop.permute.xlu1 %2379 }
 0x341   :  { %v1587_v20 = vadd.f32 %v1586_v8, %v1505_v13  ;;  %v2884_v21 = vpop.f32.mrf.mxu1  ;;  %v1753_v36 = vpop.f32.mrf.mxu0 }
 0x342   :  { %v1677_v23 = vadd.f32 %v2884_v21, %v1594_v10 }
 0x343   :  { %v1668_v27 = vpop.f32.mrf.mxu1 }
 0x344   :  { %v1760_v29 = vadd.f32 %v2891_v22, %v1677_v23  ;;  %v1669_v33 = vadd.f32 %v1668_v27, %v1587_v20 }
 0x345   :  { %v2898_v39 = vpop.f32.mrf.mxu1 }
 0x346   :  { %v1754_v42 = vadd.f32 %v1753_v36, %v1669_v33  ;;  %v1839_v43 = vadd.f32 %v2898_v39, %v1760_v29 }
 0x347   :  { %v1832_v46 = vpop.f32.mrf.mxu1 }
 0x348   :  { %v1843_v51 = vmax.f32 %v1839_v43, 0.0  ;;  %v1833_v52 = vadd.f32 %v1832_v46, %v1754_v42 }
 0x34a   :  { %v1895_v58 = vand.u32 4294901760, %v1843_v51  ;;  %v1842_v59 = vmax.f32 %v1833_v52, 0.0 }
 0x34c   :  { %v1983_v61 = vsub.f32 %v1843_v51, %v1895_v58  ;;  %v1898_v1 = vand.u32 4294901760, %v1842_v59  ;;  %2899 = vmatprep.subr.mxu0 %v1895_v58 }
 0x34d   :  { %2900 = vmatpush3.msra.mxu0 %v1895_v58 }
 0x34e   :  { %v1990_v4 = vsub.f32 %v1842_v59, %v1898_v1  ;;  %2901 = vmatprep.subr.mxu0 %v1898_v1  ;;  %v1984_v7 = vand.u32 4294901760, %v1983_v61 }
 0x34f   :  { %2902 = vmatpush3.msra.mxu0 %v1898_v1 }
 0x350   :  { %2904 = vmatmul.mubr.f32.vlgmr.msra.gmra.mxu0 %v1947_v2  ;;  %2913 = vmatprep.subr.mxu0 %v1983_v61  ;;  %v1985_v12 = vsub.f32 %v1983_v61, %v1984_v7  ;;  %v1991_v25 = vand.u32 4294901760, %v1990_v4 }
 0x351   :  { %2914 = vmatpush3.msra.mxu0 %v1983_v61  ;;  %2917 = vmatprep.mubr.f32.mxu0 %v3519_v47 }
 0x352   :  { %2915 = vmatprep.subr.mxu0 %v1990_v4  ;;  %v1986_v30 = vand.u32 4294901760, %v1985_v12  ;;  %v1992_v37 = vsub.f32 %v1990_v4, %v1991_v25 }
 0x353   :  { %2916 = vmatpush3.msra.mxu0 %v1990_v4 }
 0x354   :  { %2906 = vmatprep.subr.mxu1 %v1986_v30  ;;  %2927 = vmatprep.subr.mxu0 %v1984_v7  ;;  %v1993_v38 = vand.u32 4294901760, %v1992_v37 }
 0x355   :  { %2907 = vmatpush3.msra.mxu1 %v1986_v30  ;;  %2918 = vmatmul.mubr.f32.vlgmr.msra.gmra.mxu0 %v1944_v18 }
 0x356   :  { %2928 = vmatpush3.msra.mxu0 %v1984_v7  ;;  %2908 = vmatprep.subr.mxu1 %v1993_v38 }
 0x357   :  { %2929 = vmatprep.subr.mxu0 %v1991_v25  ;;  %2909 = vmatpush3.msra.mxu1 %v1993_v38 }
 0x358   :  { %2930 = vmatpush3.msra.mxu0 %v1991_v25  ;;  %2911 = vmatmul.mubr.f32.vlgmr.msra.gmra.mxu1 %v3530_v15 }
 0x359   :  { %2920 = vmatprep.subr.mxu1 %v1895_v58  ;;  %2924 = vmatprep.mubr.f32.mxu1 %v1935_v50 }
 0x35a   :  { %2921 = vmatpush3.msra.mxu1 %v1895_v58  ;;  %2931 = vmatprep.mubr.f32.mxu0 %v3516_v45 }
 0x35b   :  { %2922 = vmatprep.subr.mxu1 %v1898_v1  ;;  %2932 = vmatmul.mubr.f32.vlgmr.msra.gmra.mxu0 %v3530_v15 }
 0x35c   :  { %2923 = vmatpush3.msra.mxu1 %v1898_v1 }
 0x35d   :  { %2925 = vmatmul.mubr.f32.vlgmr.msra.gmra.mxu1 %v1945_v35  ;;  %2934 = vmatprep.subr.mxu1 %v1895_v58 }
 0x35e   :  { %2935 = vmatpush3.msra.mxu1 %v1895_v58  ;;  %2938 = vmatprep.mubr.f32.mxu1 %v3516_v45 }
 0x35f   :  { %2936 = vmatprep.subr.mxu1 %v1898_v1 }
 0x360   :  { %2937 = vmatpush3.msra.mxu1 %v1898_v1 }
 0x361   :  { %2939 = vmatmul.mubr.f32.vlgmr.msra.gmra.mxu1 %v3530_v15  ;;  %v2375_v15 = vpop.permute.xlu0 %2374 }
 0x365   :  { %v2396_v23 = vpop.permute.xlu0 %2395 }
 0x410   :  { %v2905_v41 = vpop.f32.mrf.mxu0 }
 0x411   :  { %v1950_v60 = vadd.f32 %v2905_v41, %v1858_v53 }
 0x412   :  { %v1939_v48 = vpop.f32.mrf.mxu0 }
 0x413   :  { %v1940_v19 = vadd.f32 %v1939_v48, %v1853_v62 }
 0x415   :  { %v2919_v49 = vpop.f32.mrf.mxu0 }
 0x417   :  { %v2112_v26 = vpop.f32.mrf.mxu0 }
 0x418   :  { %v2912_v3 = vpop.f32.mrf.mxu1 }
 0x419   :  { %v2037_v24 = vadd.f32 %v2912_v3, %v1950_v60 }
 0x41a   :  { %v2030_v28 = vpop.f32.mrf.mxu1 }
 0x41b   :  { %v2120_v34 = vadd.f32 %v2919_v49, %v2037_v24  ;;  %v2031_v40 = vadd.f32 %v2030_v28, %v1940_v19  ;;  %v2933_v45 = vpop.f32.mrf.mxu0 }
 0x41d   :  { %v2113_v44 = vadd.f32 %v2112_v26, %v2031_v40  ;;  %v2926_v47 = vpop.f32.mrf.mxu1  ;;  %v2279_v63 = vpop.f32.mrf.mxu0 }
 0x41e   :  { %v2203_v50 = vadd.f32 %v2926_v47, %v2120_v34 }
 0x41f   :  { %v2194_v55 = vpop.f32.mrf.mxu1 }
 0x420   :  { %v2286_v54 = vadd.f32 %v2933_v45, %v2203_v50  ;;  %v2195_v57 = vadd.f32 %v2194_v55, %v2113_v44 }
 0x421   :  { %v2940_v0 = vpop.f32.mrf.mxu1 }
 0x422   :  { %v2280_v5 = vadd.f32 %v2279_v63, %v2195_v57  ;;  %v2365_v6 = vadd.f32 %v2940_v0, %v2286_v54 }
 0x423   :  { %v2358_v11 = vpop.f32.mrf.mxu1 }
 0x424   :  { %v2369_v14 = vmax.f32 %v2365_v6, 0.0  ;;  %v2359_v31 = vadd.f32 %v2358_v11, %v2280_v5 }
 0x426   :  { %v2368_v32 = vmax.f32 %v2359_v31, 0.0  ;;  %v2383_v17 = vmul.f32 %v2380_v16, %v2369_v14 }
 0x428   :  { %v2382_v8 = vmul.f32 %v2375_v15, %v2368_v32 }
 0x42a   :  { %v2384_v9 = vadd.f32 %v2383_v17, %v2382_v8 }
 0x42c   :  { %v2385_v10 = vrot.slane %v2384_v9, 4 }
 0x42e   :  { %v2386_v13 = vadd.f32 %v2385_v10, %v2384_v9 }
 0x430   :  { %v2387_v18 = vrot.slane %v2386_v13, 2 }
 0x432   :  { %v2388_v20 = vadd.f32 %v2387_v18, %v2386_v13 }
 0x434   :  { %v2389_v21 = vrot.slane %v2388_v20, 1 }
 0x436   :  { %v2390_v22 = vadd.f32 %v2389_v21, %v2388_v20 }
 0x438   :  { %v2398_v27 = vadd.f32 %v2396_v23, %v2390_v22 }
 0x43a   :  { %2399 = vst [vmem:[#allocation2] sm:$0x1] %v2398_v27 }
 0x43b   :  { %2956 = shalt.err (!%p2953_p4)
}
 0x43c   :  { %2409 = dma.vmem_to_hbm [thread:$0]  %s2407_s1, 16, %s3549_s5, [#allocation3]  }
 0x43d   :  { %2965 = dma.done.wait [#allocation3], 16  }
 0x43e   :  { %2966 = vsyncadd [#allocation3], 4294967280 }
 0x43f   :  { %2413 = vsyncpa [#allocation3], 1 }

</bundles_post_ra>
